<compile_context>
chip_gen: v7x
topology: tpu7x:2x2x1
jax: 0.10.0
libtpu: 0.0.40
codegen_flags: <defaults>
</compile_context>

<pallas_src>
import functools

import jax
import jax.numpy as jnp
from jax.experimental import pallas as pl
from jax.experimental.pallas import tpu as pltpu


def _ca_kernel(x_ref, w1_ref, w2_ref, o_ref, max_acc, sum_acc,
               *, hw, hw_tile, acc_w, n_chunks, inv_hw):
    # x_ref:   (C, hw_tile)   one spatial tile of one batch element
    # w1_ref:  (Cr, C)        first 1x1 conv weight  (resident, constant index)
    # w2_ref:  (C, Cr)        second 1x1 conv weight (resident, constant index)
    # o_ref:   (1, C, 1)      sigmoid attention weights for this batch element
    # max_acc / sum_acc: (C, acc_w) f32 narrow running accumulators (VMEM)
    k = pl.program_id(1)
    num_k = pl.num_programs(1)

    @pl.when(k == 0)
    def _init():
        max_acc[...] = jnp.full_like(max_acc, -jnp.inf)
        sum_acc[...] = jnp.zeros_like(sum_acc)

    def _accumulate(mask_tail):
        # Fold the (C, hw_tile) tile into (C, acc_w) vreg partials (static
        # unrolled chunk loop), then a single RMW of each scratch accumulator.
        part_max = None
        part_sum = None
        for c in range(n_chunks):
            chunk = x_ref[:, c * acc_w:(c + 1) * acc_w].astype(jnp.float32)
            if mask_tail:
                lane = jax.lax.broadcasted_iota(jnp.int32, chunk.shape, 1)
                valid = (k * hw_tile + c * acc_w + lane) < hw
                cmax = jnp.where(valid, chunk, -jnp.inf)
                csum = jnp.where(valid, chunk, 0.0)
            else:
                cmax = chunk
                csum = chunk
            part_max = cmax if part_max is None else jnp.maximum(part_max, cmax)
            part_sum = csum if part_sum is None else part_sum + csum
        max_acc[...] = jnp.maximum(max_acc[...], part_max)
        sum_acc[...] = sum_acc[...] + part_sum

    if hw % hw_tile != 0:
        # Only the very last tile needs the lane mask; keep the steady state
        # a pure load + max + add (review item #4).
        @pl.when(k < num_k - 1)
        def _steady():
            _accumulate(False)

        @pl.when(k == num_k - 1)
        def _tail():
            _accumulate(True)
    else:
        _accumulate(False)

    @pl.when(k == num_k - 1)
    def _finalize():
        # One cross-lane fold per pool (narrow accumulators -> (C, 1)).
        max_pool = jnp.max(max_acc[...], axis=1, keepdims=True)            # (C, 1)
        avg_pool = jnp.sum(sum_acc[...], axis=1, keepdims=True) * inv_hw   # (C, 1)
        pooled = jnp.concatenate([max_pool, avg_pool], axis=1)             # (C, 2)

        w1 = w1_ref[...].astype(jnp.float32)  # (Cr, C)
        w2 = w2_ref[...].astype(jnp.float32)  # (C, Cr)

        # Fused SE MLP: one matmul per layer for both (max, avg) branches.
        h = jnp.dot(w1, pooled, preferred_element_type=jnp.float32)        # (Cr, 2)
        h = jnp.maximum(h, 0.0)                                            # ReLU
        out2 = jnp.dot(w2, h, preferred_element_type=jnp.float32)          # (C, 2)

        att = jax.nn.sigmoid(out2[:, 0:1] + out2[:, 1:2])                  # (C, 1)
        o_ref[0] = att.astype(o_ref.dtype)


def _vmem_limit_bytes():
    """Generation-aware scoped-VMEM limit (review item #3)."""
    phys = None
    try:
        info = pltpu.get_tpu_info()
        phys = getattr(info, "vmem_capacity_bytes", None)
    except Exception:
        phys = None
    if phys is None:
        phys = 64 * 1024 * 1024            # conservative default
    if phys <= 64 * 1024 * 1024:           # v7x-class: 64 MiB physical per TC
        return 40 * 1024 * 1024
    return 64 * 1024 * 1024                # v5e / v6e: 128 MiB physical


def _normalize_hw_tile(hw, hw_tile):
    """Force hw_tile to be a lane-legal tile: full extent (hw<=128) or a
    multiple of 128 that is <= hw."""
    if hw <= 128:
        return hw
    hw_tile = int(min(hw_tile, hw))
    return max(128, (hw_tile // 128) * 128)


def _choose_hw_tile(hw, c, itemsize, vmem_limit):
    """Pick the largest lane tile that keeps the double-buffered x tile plus
    the narrow accumulators comfortably inside the scoped VMEM limit."""
    if hw <= 128:
        return hw
    acc_bytes = 2 * c * 128 * 4                      # two (C, 128) f32 scratch
    budget = int(vmem_limit * 0.6) - acc_bytes       # headroom for weights etc.
    max_lanes = max(128, (budget // (2 * c * itemsize)) // 128 * 128)
    cap = 8192                                       # review item #2
    return _normalize_hw_tile(hw, min(max_lanes, cap))


def ca_forward(x, w1, w2, *, hw_tile=None):
    """x: (B, C, H, W); w1: (C//r, C); w2: (C, C//r).  Returns (B, C, 1, 1)."""
    B, C, H, W = x.shape
    Cr = w1.shape[0]
    HW = H * W

    x_flat = x.reshape(B, C, HW)
    itemsize = jnp.dtype(x.dtype).itemsize

    vmem_limit = _vmem_limit_bytes()
    if hw_tile is None:
        hw_tile = _choose_hw_tile(HW, C, itemsize, vmem_limit)
    hw_tile = _normalize_hw_tile(HW, hw_tile)

    acc_w = min(hw_tile, 128)
    n_chunks = hw_tile // acc_w
    assert n_chunks * acc_w == hw_tile

    num_k = pl.cdiv(HW, hw_tile)
    inv_hw = 1.0 / float(HW)

    kernel = functools.partial(
        _ca_kernel, hw=HW, hw_tile=hw_tile, acc_w=acc_w,
        n_chunks=n_chunks, inv_hw=inv_hw)

    cost = pl.CostEstimate(
        flops=int(2 * B * C * HW + 8 * B * C * Cr),
        transcendentals=int(B * C),
        bytes_accessed=int(itemsize * B * C * HW + 8 * C * Cr + itemsize * B * C),
    )

    out = pl.pallas_call(
        kernel,
        out_shape=jax.ShapeDtypeStruct((B, C, 1), x.dtype),
        grid_spec=pltpu.PrefetchScalarGridSpec(
            num_scalar_prefetch=0,
            grid=(B, num_k),
            in_specs=[
                # x: one batch element's (C, hw_tile) slab per grid step.
                pl.BlockSpec((None, C, hw_tile), lambda b, k: (b, 0, k)),
                # Weights: constant block index -> DMA'd once, stay resident.
                pl.BlockSpec((Cr, C), lambda b, k: (0, 0)),
                pl.BlockSpec((C, Cr), lambda b, k: (0, 0)),
            ],
            out_specs=pl.BlockSpec((1, C, 1), lambda b, k: (b, 0, 0)),
            scratch_shapes=[
                pltpu.VMEM((C, acc_w), jnp.float32),  # narrow running max
                pltpu.VMEM((C, acc_w), jnp.float32),  # narrow running sum
            ],
        ),
        compiler_params=pltpu.CompilerParams(
            dimension_semantics=("parallel", "arbitrary"),
            vmem_limit_bytes=vmem_limit,
        ),
        cost_estimate=cost,
    )(x_flat, w1, w2)

    return out.reshape(B, C, 1, 1)


def _reference(x, w1, w2):
    B, C, H, W = x.shape
    xf = x.reshape(B, C, H * W)
    mx = jnp.max(xf, axis=-1)
    av = jnp.mean(xf, axis=-1)

    def se(p):
        return jnp.maximum(p @ w1.T, 0.0) @ w2.T

    return jax.nn.sigmoid(se(mx) + se(av)).reshape(B, C, 1, 1)


if __name__ == "__main__":
    B, C, reduction = 2, 64, 16
    Cr = C // reduction  # 4

    key = jax.random.PRNGKey(0)
    kx, k1, k2, kx2 = jax.random.split(key, 4)

    # Conv2d 1x1 (bias=False) weights are dense matrices.
    w1 = jax.random.normal(k1, (Cr, C), dtype=jnp.float32) * 0.1
    w2 = jax.random.normal(k2, (C, Cr), dtype=jnp.float32) * 0.1

    # Case 1: single-block spatial extent (HW = 256, auto tile = 256).
    x1 = jax.random.normal(kx, (B, C, 16, 16), dtype=jnp.float32)
    out1 = ca_forward(x1, w1, w2)
    jax.block_until_ready(out1)
    ref1 = _reference(x1, w1, w2)
    assert out1.shape == (B, C, 1, 1)
    assert jnp.allclose(out1, ref1, atol=1e-5, rtol=1e-5)

    # Case 2: multi-tile HW reduction with gated tail mask (HW=400, tile=128).
    x2 = jax.random.normal(kx2, (B, C, 20, 20), dtype=jnp.float32)
    out2 = ca_forward(x2, w1, w2, hw_tile=128)
    jax.block_until_ready(out2)
    ref2 = _reference(x2, w1, w2)
    assert jnp.allclose(out2, ref2, atol=1e-5, rtol=1e-5)

    # Case 3: auto tiling on non-multiple-of-128 HW (tile=384 -> multi-chunk
    # fold + fully-masked trailing chunks on the tail tile).
    out3 = ca_forward(x2, w1, w2)
    jax.block_until_ready(out3)
    assert jnp.allclose(out3, ref2, atol=1e-5, rtol=1e-5)

    print("KERNEL_OK")
</pallas_src>

<mosaic_0001>
module attributes {stable_mosaic.version = 11 : i64} {
  func.func @_ca_kernel(%arg0: i32, %arg1: i32, %arg2: memref<1x64x256xf32, #tpu.memory_space<vmem>>, %arg3: memref<4x64xf32, #tpu.memory_space<vmem>>, %arg4: memref<64x4xf32, #tpu.memory_space<vmem>>, %arg5: memref<1x64x1xf32, #tpu.memory_space<vmem>>, %arg6: memref<64x128xf32, #tpu.memory_space<vmem>>, %arg7: memref<64x128xf32, #tpu.memory_space<vmem>>) attributes {dimension_semantics = [#tpu.dimension_semantics<parallel>, #tpu.dimension_semantics<arbitrary>], iteration_bounds = array<i64: 2, 1>, scalar_prefetch = 0 : i64, scratch_operands = 2 : i64, tpu.core_type = #tpu.core_type<tc>, window_params = [{transform_indices = @transform_0, window_bounds = array<i64: 1, 64, 256>}, {pipeline_mode = #tpu.pipeline_mode<synchronous>, transform_indices = @transform_1, window_bounds = array<i64: 4, 64>}, {pipeline_mode = #tpu.pipeline_mode<synchronous>, transform_indices = @transform_2, window_bounds = array<i64: 64, 4>}, {transform_indices = @transform_3, window_bounds = array<i64: 1, 64, 1>}]} {
    %c0_i32 = arith.constant 0 : i32
    %0 = arith.cmpi eq, %arg1, %c0_i32 : i32
    %1 = arith.extui %0 : i1 to i32
    %c0_i32_0 = arith.constant 0 : i32
    %2 = arith.cmpi ne, %1, %c0_i32_0 : i32
    scf.if %2 {
      %cst = arith.constant 0xFF800000 : f32
      %18 = vector.broadcast %cst : f32 to vector<64x128xf32>
      %c0_15 = arith.constant 0 : index
      %c0_16 = arith.constant 0 : index
      %19 = vector.load %arg6[%c0_15, %c0_16] : memref<64x128xf32, #tpu.memory_space<vmem>>, vector<64x128xf32>
      tpu.vector_store %arg6[%c0_15, %c0_16], %18 {strides = array<i32>} : memref<64x128xf32, #tpu.memory_space<vmem>>, vector<64x128xf32>,
      %cst_17 = arith.constant 0.000000e+00 : f32
      %20 = vector.broadcast %cst_17 : f32 to vector<64x128xf32>
      %c0_18 = arith.constant 0 : index
      %c0_19 = arith.constant 0 : index
      %21 = vector.load %arg7[%c0_18, %c0_19] : memref<64x128xf32, #tpu.memory_space<vmem>>, vector<64x128xf32>
      tpu.vector_store %arg7[%c0_18, %c0_19], %20 {strides = array<i32>} : memref<64x128xf32, #tpu.memory_space<vmem>>, vector<64x128xf32>,
    } else {
    }
    %c0 = arith.constant 0 : index
    %c0_1 = arith.constant 0 : index
    %c0_2 = arith.constant 0 : index
    %3 = vector.load %arg2[%c0, %c0_1, %c0_2] : memref<1x64x256xf32, #tpu.memory_space<vmem>>, vector<1x64x128xf32>
    %4 = vector.shape_cast %3 : vector<1x64x128xf32> to vector<64x128xf32>
    %c0_3 = arith.constant 0 : index
    %c0_4 = arith.constant 0 : index
    %c128 = arith.constant 128 : index
    %5 = vector.load %arg2[%c0_3, %c0_4, %c128] : memref<1x64x256xf32, #tpu.memory_space<vmem>>, vector<1x64x128xf32>
    %6 = vector.shape_cast %5 : vector<1x64x128xf32> to vector<64x128xf32>
    %7 = arith.maximumf %4, %6 : vector<64x128xf32>
    %8 = arith.addf %4, %6 : vector<64x128xf32>
    %c0_5 = arith.constant 0 : index
    %c0_6 = arith.constant 0 : index
    %9 = vector.load %arg6[%c0_5, %c0_6] : memref<64x128xf32, #tpu.memory_space<vmem>>, vector<64x128xf32>
    %10 = arith.maximumf %9, %7 : vector<64x128xf32>
    %c0_7 = arith.constant 0 : index
    %c0_8 = arith.constant 0 : index
    %11 = vector.load %arg6[%c0_7, %c0_8] : memref<64x128xf32, #tpu.memory_space<vmem>>, vector<64x128xf32>
    tpu.vector_store %arg6[%c0_7, %c0_8], %10 {strides = array<i32>} : memref<64x128xf32, #tpu.memory_space<vmem>>, vector<64x128xf32>,
    %c0_9 = arith.constant 0 : index
    %c0_10 = arith.constant 0 : index
    %12 = vector.load %arg7[%c0_9, %c0_10] : memref<64x128xf32, #tpu.memory_space<vmem>>, vector<64x128xf32>
    %13 = arith.addf %12, %8 : vector<64x128xf32>
    %c0_11 = arith.constant 0 : index
    %c0_12 = arith.constant 0 : index
    %14 = vector.load %arg7[%c0_11, %c0_12] : memref<64x128xf32, #tpu.memory_space<vmem>>, vector<64x128xf32>
    tpu.vector_store %arg7[%c0_11, %c0_12], %13 {strides = array<i32>} : memref<64x128xf32, #tpu.memory_space<vmem>>, vector<64x128xf32>,
    %c0_i32_13 = arith.constant 0 : i32
    %15 = arith.cmpi eq, %arg1, %c0_i32_13 : i32
    %16 = arith.extui %15 : i1 to i32
    %c0_i32_14 = arith.constant 0 : i32
    %17 = arith.cmpi ne, %16, %c0_i32_14 : i32
    scf.if %17 {
      %c0_15 = arith.constant 0 : index
      %c0_16 = arith.constant 0 : index
      %18 = vector.load %arg6[%c0_15, %c0_16] : memref<64x128xf32, #tpu.memory_space<vmem>>, vector<64x128xf32>
      %cst = arith.constant dense<0xFF800000> : vector<64xf32>
      %19 = vector.multi_reduction <maximumf>, %18, %cst [1] : vector<64x128xf32> to vector<64xf32>
      %20 = vector.shape_cast %19 : vector<64xf32> to vector<64x1xf32>
      %c0_17 = arith.constant 0 : index
      %c0_18 = arith.constant 0 : index
      %21 = vector.load %arg7[%c0_17, %c0_18] : memref<64x128xf32, #tpu.memory_space<vmem>>, vector<64x128xf32>
      %cst_19 = arith.constant dense<0.000000e+00> : vector<64xf32>
      %22 = vector.multi_reduction <add>, %21, %cst_19 [1] : vector<64x128xf32> to vector<64xf32>
      %23 = vector.shape_cast %22 : vector<64xf32> to vector<64x1xf32>
      %cst_20 = arith.constant 3.906250e-03 : f32
      %24 = vector.broadcast %cst_20 : f32 to vector<64x1xf32>
      %25 = arith.mulf %23, %24 : vector<64x1xf32>
      %26 = tpu.concatenate %20, %25 in 1 : vector<64x1xf32>, vector<64x1xf32> -> vector<64x2xf32>
      %c0_21 = arith.constant 0 : index
      %c0_22 = arith.constant 0 : index
      %27 = vector.load %arg3[%c0_21, %c0_22] : memref<4x64xf32, #tpu.memory_space<vmem>>, vector<4x64xf32>
      %c0_23 = arith.constant 0 : index
      %c0_24 = arith.constant 0 : index
      %28 = vector.load %arg4[%c0_23, %c0_24] : memref<64x4xf32, #tpu.memory_space<vmem>>, vector<64x4xf32>
      %cst_25 = arith.constant dense<0.000000e+00> : vector<4x2xf32>
      %29 = tpu.matmul %27, %26, %cst_25 {dimension_numbers = #tpu.dot_dimension_numbers<[1], [0], [0], [1], [0, 0, 1, 1], [], []>} : vector<4x64xf32>, vector<64x2xf32>, vector<4x2xf32> -> vector<4x2xf32>
      %cst_26 = arith.constant 0.000000e+00 : f32
      %30 = vector.broadcast %cst_26 : f32 to vector<4x2xf32>
      %31 = arith.maximumf %29, %30 : vector<4x2xf32>
      %cst_27 = arith.constant dense<0.000000e+00> : vector<64x2xf32>
      %32 = tpu.matmul %28, %31, %cst_27 {dimension_numbers = #tpu.dot_dimension_numbers<[1], [0], [0], [1], [0, 0, 1, 1], [], []>} : vector<64x4xf32>, vector<4x2xf32>, vector<64x2xf32> -> vector<64x2xf32>
      %33 = vector.extract_strided_slice %32 {offsets = [0, 0], sizes = [64, 1], strides = [1, 1]} : vector<64x2xf32> to vector<64x1xf32>
      %34 = vector.extract_strided_slice %32 {offsets = [0, 1], sizes = [64, 1], strides = [1, 1]} : vector<64x2xf32> to vector<64x1xf32>
      %35 = arith.addf %33, %34 : vector<64x1xf32>
      %36 = arith.negf %35 : vector<64x1xf32>
      %37 = math.exp %36 : vector<64x1xf32>
      %cst_28 = arith.constant 1.000000e+00 : f32
      %38 = vector.broadcast %cst_28 : f32 to vector<64x1xf32>
      %39 = arith.addf %38, %37 : vector<64x1xf32>
      %40 = arith.divf %38, %39 : vector<64x1xf32>
      %c0_29 = arith.constant 0 : index
      %c0_30 = arith.constant 0 : index
      %c0_31 = arith.constant 0 : index
      %41 = vector.load %arg5[%c0_29, %c0_30, %c0_31] : memref<1x64x1xf32, #tpu.memory_space<vmem>>, vector<1x64x1xf32>
      %42 = vector.shape_cast %41 : vector<1x64x1xf32> to vector<64x1xf32>
      %43 = vector.shape_cast %40 : vector<64x1xf32> to vector<1x64x1xf32>
      tpu.vector_store %arg5[%c0_29, %c0_30, %c0_31], %43 {strides = array<i32>} : memref<1x64x1xf32, #tpu.memory_space<vmem>>, vector<1x64x1xf32>,
    } else {
    }
    return
  }
  func.func @transform_0(%arg0: i32, %arg1: i32) -> (i32, i32, i32) {
    %c0_i32 = arith.constant 0 : i32
    %c0_i32_0 = arith.constant 0 : i32
    return %arg0, %c0_i32, %arg1 : i32, i32, i32
  }
  func.func @transform_1(%arg0: i32, %arg1: i32) -> (i32, i32) {
    %c0_i32 = arith.constant 0 : i32
    %c0_i32_0 = arith.constant 0 : i32
    %c0_i32_1 = arith.constant 0 : i32
    return %c0_i32, %c0_i32_0 : i32, i32
  }
  func.func @transform_2(%arg0: i32, %arg1: i32) -> (i32, i32) {
    %c0_i32 = arith.constant 0 : i32
    %c0_i32_0 = arith.constant 0 : i32
    %c0_i32_1 = arith.constant 0 : i32
    return %c0_i32, %c0_i32_0 : i32, i32
  }
  func.func @transform_3(%arg0: i32, %arg1: i32) -> (i32, i32, i32) {
    %c0_i32 = arith.constant 0 : i32
    %c0_i32_0 = arith.constant 0 : i32
    %c0_i32_1 = arith.constant 0 : i32
    return %arg0, %c0_i32, %c0_i32_0 : i32, i32, i32
  }
}

</mosaic_0001>

<bundles_post_ra>
// kernel: tpu_custom_call.1
= control target key start
LH: loop header
LB: loop body
LE: loop exit
PB: predicated region body
PF: predicated region fallthrough
CT: control target
= control target key end

     0   :  { %8 = vsyncpa [#allocation5], 0  ;;  %s1259_s0 = inlined_call_operand.hbm [shape: f32[2,64,256], index: 0, kind: input, shape index: {}]   ;;  %s1260_s1 = inlined_call_operand.vmem [shape: f32[4,64], index: 1, kind: input, shape index: {}]   ;;  %s1261_s2 = inlined_call_operand.vmem [shape: f32[64,4], index: 2, kind: input, shape index: {}]   ;;  %s1262_s3 = inlined_call_operand.vmem [shape: f32[2,64,1], index: 3, kind: output, shape index: {}]  }
   0x1   :  { %10 = vsyncpa [#allocation5 + $0x1], 0  ;;  %s1066_s12 = smov 0   ;;  %s1068_s13 = smov 0  }
   0x2   :  { %s1070_s14 = smov 0   ;;  %s1072_s15 = smov 0  }
   0x3   :  { %s1074_s16 = smov 0   ;;  %s1076_s17 = smov 0  }
   0x4 LB: > { %s768_s18 = sadd.s32 4294967295, %s1037_s17   ;;  %s28_s19 = sadd.s32 1, %s1033_s16  ;;  %s1037_s17 = sphi %s1076_s17, %s16_s17   ;;  %s1033_s16 = sphi %s1074_s16, %s1270_s16   ;;  %s1029_s15 = sphi %s1072_s15, %s1269_s15   ;;  %s1025_s14 = sphi %s1070_s14, %s1268_s14   ;;  %s1021_s13 = sphi %s1068_s13, %s1267_s13   ;;  %s1017_s12 = sphi %s1066_s12, %s1266_s12  }
   0x5   : > { %p30_p0 = scmp.ge.s32.totalorder %s28_s19, 2  ;;  %s37_s20 = sadd.s32 1, %s1025_s14 }
   0x6   : > { %p44_p1 = scmp.ne.s32.totalorder %s1025_s14, %s1021_s13  ;;  %p45_p2 = scmp.eq.s32.totalorder %s1037_s17, 0 }
   0x7   : > { %s1272_s19 = smov (%p30_p0, %s28_s19), 0  ;;  %p50_p4 = scmp.ne.s32.totalorder %s1021_s13, %s1017_s12 }
   0x8   : > { %p1102_p3 = por %p45_p2, %p44_p1  ;;  %s32_s22 = ssub.s32 %s1033_s16, %s1272_s19 }
   0x9   : > { %p51_p5 = scmp.eq.s32.totalorder %s768_s18, 0  ;;  %p35_p6 = scmp.eq.s32.totalorder %s32_s22, 0 }
   0xa   : > { %p870_p8 = scmp.lt.s32.totalorder %s1037_s17, 2  ;;  %s148_s25 = sand.u32 1, %s1025_s14  }
   0xb   : > { %p1109_p7 = por %p51_p5, %p50_p4  ;;  %s799_s26 = sshll.u32 %s1033_s16, 11 }
   0xc   : > { %s1115_s24 = scalar_select %p35_p6, %s1025_s14, %s37_s20  }
   0xd   : > { %s772_s27 = sshll.u32 %s148_s25, 7  ;;  %s1122_s30 = scalar_lea.hbm %s1259_s0, %s799_s26 }
   0xe   : > { %s152_s4 = scalar_lea.vmem [#allocation4], %s772_s27  ;;  %p1126_p9 = pnand %p870_p8, %p1102_p3 }
   0xf   : > { %s161_s5 = sshll.u32 %s152_s4, 4  ;;  %s1132_s7 = scalar_lea.sflag [#allocation5], %s148_s25  ;;  %s1130_s5 = int_to_ptr.vmem [resolvable:$true] %s161_s5 }
  0x10   : > { %s957_s8 = scalar_lea.hbm %s1122_s30, 2048  ;;  %p959_p11 = pneg %p1126_p9 }
  0x11   : > { %p958_p10 = scmp.ne.s32.totalorder %s1122_s30, %s957_s8  ;;  %s962_s11 = scalar_lea.hbm %s1259_s0, 4096 }
  0x12   : > { %p963_p0 = scmp.lt.u32.totalorder %s1122_s30, %s1259_s0  ;;  %p964_p1 = scmp.lt.u32.totalorder %s962_s11, %s957_s8 }
  0x13   : > { %p960_p12 = pnand %p959_p11, %p958_p10  ;;  %p966_p3 = scmp.lt.u32.totalorder %s957_s8, %s1122_s30 }
  0x14   : > { %p965_p2 = por %p964_p1, %p963_p0 }
  0x15   : > { %p961_p13 = pneg %p960_p12 }
  0x16   : > { %p967_p4 = por %p966_p3, %p965_p2 }
  0x18   : > { %p968_p5 = pnand %p967_p4, %p961_p13 }
  0x1a   : > { %971 = shalt.err (!%p968_p5)
}
  0x1b   : > { %s972_s20 = scalar_lea.vmem %s1130_s5, 2048  ;;  %s1039_s21 = smov [#allocation4]  }
  0x1c   : > { %p973_p6 = scmp.ne.s32.totalorder %s1130_s5, %s972_s20  ;;  %s977_s22 = sshll.u32 %s1039_s21, 4  ;;  %s978_s22 = int_to_ptr.vmem [resolvable:$false] %s977_s22 }
  0x1d   : > { %s979_s25 = scalar_lea.vmem %s978_s22, 4096  ;;  %p980_p12 = scmp.lt.s32.totalorder %s1130_s5, %s978_s22 }
  0x1e   : > { %p975_p8 = pnand %p973_p6, %p959_p11  ;;  %p981_p0 = scmp.lt.s32.totalorder %s979_s25, %s972_s20 }
  0x20   : > { %p976_p10 = pneg %p975_p8  ;;  %p982_p1 = por %p981_p0, %p980_p12 }
  0x22   : > { %p983_p2 = pnand %p982_p1, %p976_p10 }
  0x24   : > { %986 = shalt.err (!%p983_p2)
}
  0x25   : > { %s1040_s26 = smov 256   ;;  %s1041_s27 = smov 16  }
  0x26   : > { %869 = dma.hbm_to_vmem [thread:$0]  (!%p1126_p9), %s1122_s30, 2048, %s1130_s5, %s1132_s7, %s1040_s26, %s1040_s26, %s1041_s27  }
  0x27   : > { %p775_p11 = scmp.ge.s32.totalorder %s1037_s17, 1  ;;  %p169_p13 = scmp.lt.s32.totalorder %s1037_s17, 3 }
  0x29   : > { %p170_p3 = pnand %p775_p11, %p169_p13 }
  0x2a   : > { %s175_s28 = sand.u32 (!%p170_p3), 1, %s1021_s13  }
  0x2b   : > { %173 = sbr.rel (%p170_p3) target bundleno = 818 (0x332), region = 32  ;;  %s776_s29 = sshll.u32 (!%p170_p3), %s175_s28, 7 }
  0x2c   : > { %s176_s4 = scalar_lea.sflag (!%p170_p3), [#allocation5], %s175_s28  ;;  %s1163_s8 = scalar_lea.vmem (!%p170_p3), [#allocation4], %s776_s29 }
  0x32   : > { %1012 = dma.done.wait (%p1109_p7), %s176_s4, 2048  }
  0x33   : > { %1014 = vsyncadd (%p1109_p7), %s176_s4, 4294965248  ;;  %v228_v0 = vld [vmem:[%s1163_s8] sm:$0xff]  ;;  %v236_v1 = vld [vmem:[%s1163_s8 + $0x8] sm:$0xff]  ;;  %v1042_v30 = vmov 0.0|0.0   ;;  %vm1043_vm0 = vmmov 0   ;;  %v1044_v33 = vmov 0.0  }
  0x34   : > { %v229_v2 = vld [vmem:[%s1163_s8 + $0x10] sm:$0xff]  ;;  %v252_v3 = vadd.f32 %v236_v1, %v228_v0  ;;  %v244_v4 = vmax.f32 %v228_v0, %v236_v1  ;;  %v237_v5 = vld [vmem:[%s1163_s8 + $0x18] sm:$0xff]  ;;  %v230_v8 = vld [vmem:[%s1163_s8 + $0x20] sm:$0xff]  ;;  %852 = vmatprep.subr.bf16.mxu0 %v1042_v30  ;;  %835 = vmatprep.mubr.msk.f32.mxu0 %vm1043_vm0, %v1044_v33  ;;  %vm367_vm1 = vcmask 7168   ;;  %vm385_vm2 = vcmask 523264   ;;  %s1045_s4 = smov 127  }
  0x35   : > { %v253_v6 = vadd.f32 %v237_v5, %v229_v2  ;;  %v245_v7 = vmax.f32 %v229_v2, %v237_v5  ;;  %v238_v9 = vld [vmem:[%s1163_s8 + $0x28] sm:$0xff]  ;;  %v231_v10 = vld [vmem:[%s1163_s8 + $0x30] sm:$0xff]  ;;  %v239_v11 = vld [vmem:[%s1163_s8 + $0x38] sm:$0xff]  ;;  %vm460_vm3 = vcmask 31744   ;;  %vm485_vm4 = vcmask 1043456   ;;  %p203_p7 = scmp.lt.s32.totalorder %s1029_s15, 1 }
  0x36   : > { %343 = vadd.xlane.f32.xlu0 %v252_v3  ;;  %319 = vmax.xlane.f32.xlu1 %v244_v4  ;;  %v254_v12 = vadd.f32 %v238_v9, %v230_v8  ;;  %v255_v13 = vadd.f32 %v239_v11, %v231_v10  ;;  %v246_v14 = vmax.f32 %v230_v8, %v238_v9  ;;  %v232_v16 = vld [vmem:[%s1163_s8 + $0x40] sm:$0xff]  ;;  %v240_v17 = vld [vmem:[%s1163_s8 + $0x48] sm:$0xff]  ;;  %v233_v18 = vld [vmem:[%s1163_s8 + $0x50] sm:$0xff] }
  0x37   : > { %v247_v15 = vmax.f32 %v231_v10, %v239_v11  ;;  %v241_v19 = vld [vmem:[%s1163_s8 + $0x58] sm:$0xff]  ;;  %v256_v20 = vadd.f32 %v240_v17, %v232_v16  ;;  %v248_v22 = vmax.f32 %v232_v16, %v240_v17  ;;  %v234_v24 = vld [vmem:[%s1163_s8 + $0x60] sm:$0xff]  ;;  %v242_v25 = vld [vmem:[%s1163_s8 + $0x68] sm:$0xff]  ;;  %s1274_s15 = smov (!%p203_p7, %s1029_s15), 1 }
  0x38   : > { %v257_v21 = vadd.f32 %v241_v19, %v233_v18  ;;  %v249_v23 = vmax.f32 %v233_v18, %v241_v19  ;;  %v235_v26 = vld [vmem:[%s1163_s8 + $0x70] sm:$0xff]  ;;  %v243_v27 = vld [vmem:[%s1163_s8 + $0x78] sm:$0xff]  ;;  %v258_v28 = vadd.f32 %v242_v25, %v234_v24  ;;  %v250_v31 = vmax.f32 %v234_v24, %v242_v25  ;;  %v378_v11 = vld [vmem:[%s1261_s2 + $0x8] sm:$0xff]  ;;  %s800_s8 = sshll.u32 %s1274_s15, 6 }
  0x39   : > { %v259_v29 = vadd.f32 %v243_v27, %v235_v26  ;;  %v251_v32 = vmax.f32 %v235_v26, %v243_v27  ;;  %v383_v16 = vld [vmem:[%s1261_s2 + $0x30] sm:$0xff]  ;;  %v384_v17 = vld [vmem:[%s1261_s2 + $0x38] sm:$0xff]  ;;  %s207_s5 = scalar_lea.vmem %s1262_s3, %s800_s8 }
  0x3a   : > { %345 = vadd.xlane.f32.xlu0 %v253_v6  ;;  %321 = vmax.xlane.f32.xlu1 %v245_v7  ;;  %v376_v6 = vld [vmem:[%s1260_s1] sm:$0xf] }
  0x3b   : > { %v377_v7 = vld [vmem:[%s1261_s2] sm:$0xff] }
  0x3c   : > { %840 = vmatprep.mubr.msk.f32.mxu1 %vm460_vm3, %v377_v7 }
  0x3e   : > { %347 = vadd.xlane.f32.xlu0 %v254_v12  ;;  %349 = vadd.xlane.f32.xlu1 %v255_v13  ;;  %v379_v12 = vld [vmem:[%s1261_s2 + $0x10] sm:$0xff]  ;;  %v380_v13 = vld [vmem:[%s1261_s2 + $0x18] sm:$0xff] }
  0x42   : > { %323 = vmax.xlane.f32.xlu0 %v246_v14  ;;  %325 = vmax.xlane.f32.xlu1 %v247_v15  ;;  %v381_v14 = vld [vmem:[%s1261_s2 + $0x20] sm:$0xff]  ;;  %v382_v15 = vld [vmem:[%s1261_s2 + $0x28] sm:$0xff] }
  0x46   : > { %351 = vadd.xlane.f32.xlu0 %v256_v20  ;;  %353 = vadd.xlane.f32.xlu1 %v257_v21 }
  0x4a   : > { %327 = vmax.xlane.f32.xlu0 %v248_v22  ;;  %329 = vmax.xlane.f32.xlu1 %v249_v23 }
  0x4e   : > { %355 = vadd.xlane.f32.xlu0 %v258_v28  ;;  %357 = vadd.xlane.f32.xlu1 %v259_v29 }
  0x52   : > { %331 = vmax.xlane.f32.xlu0 %v250_v31  ;;  %333 = vmax.xlane.f32.xlu1 %v251_v32 }
  0xc3   : > { %v344_v34 = vpop.xlane.xlu0 %343  ;;  %v320_v35 = vpop.xlane.xlu1 %319 }
  0xc4   : > { %v359_v36 = vmul.f32 0.00390625, %v344_v34 }
  0xc6   : > { %v368_v40 = vsel %vm367_vm1, %v320_v35, %v359_v36 }
  0xc7   : > { %v346_v37 = vpop.xlane.xlu0 %345  ;;  %v322_v38 = vpop.xlane.xlu1 %321 }
  0xc8   : > { %v360_v39 = vmul.f32 0.00390625, %v346_v37 }
  0xca   : > { %v369_v41 = vsel %vm367_vm1, %v322_v38, %v360_v39 }
  0xcb   : > { %v348_v42 = vpop.xlane.xlu0 %347  ;;  %v350_v43 = vpop.xlane.xlu1 %349  ;;  %v853_v44 = vpack.c.bf16 %v369_v41, %v368_v40 }
  0xcc   : > { %v361_v45 = vmul.f32 0.00390625, %v348_v42  ;;  %v362_v46 = vmul.f32 0.00390625, %v350_v43 }
  0xcd   : > { %854 = vmatpush3.bf16.msra.mxu0 %v853_v44 }
  0xce   : > { %855 = vmatprep.subr.bf16.mxu0 %v1042_v30 }
  0xcf   : > { %v324_v47 = vpop.xlane.xlu0 %323  ;;  %v326_v48 = vpop.xlane.xlu1 %325 }
  0xd0   : > { %v370_v49 = vsel %vm367_vm1, %v324_v47, %v361_v45  ;;  %v371_v50 = vsel %vm367_vm1, %v326_v48, %v362_v46 }
  0xd1   : > { %v856_v51 = vpack.c.bf16 %v371_v50, %v370_v49 }
  0xd3   : > { %v352_v52 = vpop.xlane.xlu0 %351  ;;  %857 = vmatpush3.bf16.msra.mxu0 %v856_v51  ;;  %v354_v53 = vpop.xlane.xlu1 %353 }
  0xd4   : > { %858 = vmatprep.subr.bf16.mxu0 %v1042_v30  ;;  %v363_v54 = vmul.f32 0.00390625, %v352_v52  ;;  %v364_v55 = vmul.f32 0.00390625, %v354_v53 }
  0xd7   : > { %v328_v56 = vpop.xlane.xlu0 %327  ;;  %v330_v57 = vpop.xlane.xlu1 %329 }
  0xd8   : > { %v372_v58 = vsel %vm367_vm1, %v328_v56, %v363_v54  ;;  %v373_v59 = vsel %vm367_vm1, %v330_v57, %v364_v55 }
  0xd9   : > { %v859_v60 = vpack.c.bf16 %v373_v59, %v372_v58 }
  0xdb   : > { %v356_v61 = vpop.xlane.xlu0 %355  ;;  %860 = vmatpush3.bf16.msra.mxu0 %v859_v60  ;;  %v358_v62 = vpop.xlane.xlu1 %357 }
  0xdc   : > { %861 = vmatprep.subr.bf16.mxu0 %v1042_v30  ;;  %v365_v63 = vmul.f32 0.00390625, %v356_v61  ;;  %v366_v0 = vmul.f32 0.00390625, %v358_v62 }
  0xdf   : > { %v332_v1 = vpop.xlane.xlu0 %331  ;;  %v334_v2 = vpop.xlane.xlu1 %333 }
  0xe0   : > { %v374_v3 = vsel %vm367_vm1, %v332_v1, %v365_v63  ;;  %v375_v4 = vsel %vm367_vm1, %v334_v2, %v366_v0 }
  0xe1   : > { %v862_v5 = vpack.c.bf16 %v375_v4, %v374_v3 }
  0xe3   : > { %863 = vmatpush3.bf16.msra.mxu0 %v862_v5 }
  0xe6   : > { %836 = vmatmul.mubr.msk.f32.vlgmr.msra.gmra.mrb[0].mxu0 %vm385_vm2, %v376_v6 }
 0x1b9   : > { %v455_v8 = vpop.f32.mrb[0].mxu0 }
 0x1ba   : > { %v459_v9 = vmax.f32 %v455_v8, 0.0  ;;  %v837_v10 = vpop.f32.mrb[1].mxu0 }
 0x1bc   : > { %838 = vmatprep.subr.msk.mxu1 %vm485_vm4, %v459_v9 }
 0x1bd   : > { %839 = vmatpush3.msk.msra.mxu1 %vm485_vm4, %v459_v9 }
 0x1be   : > { %841 = vmatmul.mubr.msk.f32.vlgmr.msra.gmra.mrb[0].mxu1 %vm460_vm3, %v378_v11 }
 0x1bf   : > { %843 = vmatprep.mubr.msk.f32.mxu1 %vm460_vm3, %v379_v12 }
 0x1c2   : > { %844 = vmatmul.mubr.msk.f32.gmra.mrb[2].mxu1 %vm460_vm3, %v380_v13 }
 0x1c3   : > { %846 = vmatprep.mubr.msk.f32.mxu1 %vm460_vm3, %v381_v14 }
 0x1c6   : > { %847 = vmatmul.mubr.msk.f32.gmra.mrb[4].mxu1 %vm460_vm3, %v382_v15 }
 0x1c7   : > { %849 = vmatprep.mubr.msk.f32.mxu1 %vm460_vm3, %v383_v16 }
 0x1ca   : > { %850 = vmatmul.mubr.msk.f32.gmra.mrb[6].mxu1 %vm460_vm3, %v384_v17 }
 0x291   : > { %v842_v18 = vpop.f32.mrb[0].mxu1 }
 0x292   : > { %604 = vrot.lane.b32.xlu1 %v842_v18, %s1045_s4  ;;  %v555_v19 = vpop.f32.mrb[1].mxu1 }
 0x293   : > { %602 = vrot.lane.b32.xlu0 %v555_v19, %s1045_s4 }
 0x295   : > { %v845_v20 = vpop.f32.mrb[2].mxu1 }
 0x296   : > { %608 = vrot.lane.b32.xlu1 %v845_v20, %s1045_s4  ;;  %v565_v21 = vpop.f32.mrb[3].mxu1 }
 0x299   : > { %v848_v22 = vpop.f32.mrb[4].mxu1 }
 0x29a   : > { %606 = vrot.lane.b32.xlu1 %v565_v21, %s1045_s4  ;;  %v575_v23 = vpop.f32.mrb[5].mxu1 }
 0x29b   : > { %610 = vrot.lane.b32.xlu0 %v575_v23, %s1045_s4 }
 0x29d   : > { %v851_v24 = vpop.f32.mrb[6].mxu1 }
 0x29e   : > { %612 = vrot.lane.b32.xlu1 %v848_v22, %s1045_s4  ;;  %v585_v25 = vpop.f32.mrb[7].mxu1 }
 0x29f   : > { %614 = vrot.lane.b32.xlu0 %v585_v25, %s1045_s4 }
 0x2a2   : > { %616 = vrot.lane.b32.xlu1 %v851_v24, %s1045_s4 }
 0x304   : > { %v605_v26 = vpop.permute.xlu1 %604 }
 0x305   : > { %v627_v27 = vadd.f32 %v842_v18, %v605_v26  ;;  %v603_v28 = vpop.permute.xlu0 %602 }
 0x306   : > { %v626_v29 = vadd.f32 %v603_v28, %v555_v19 }
 0x307   : > { %v790_v30 = vmul.f32 -1.442695, %v627_v27 }
 0x308   : > { %v789_v31 = vmul.f32 -1.442695, %v626_v29  ;;  %v609_v32 = vpop.permute.xlu1 %608 }
 0x309   : > { %925 = vpow2.f32 %v790_v30  ;;  %v629_v33 = vadd.f32 %v845_v20, %v609_v32 }
 0x30a   : > { %927 = vpow2.f32 %v789_v31 }
 0x30b   : > { %v792_v34 = vmul.f32 -1.442695, %v629_v33 }
 0x30c   : > { %v607_v35 = vpop.permute.xlu1 %606 }
 0x30d   : > { %929 = vpow2.f32 %v792_v34  ;;  %v628_v36 = vadd.f32 %v607_v35, %v565_v21  ;;  %v611_v37 = vpop.permute.xlu0 %610 }
 0x30e   : > { %v630_v38 = vadd.f32 %v611_v37, %v575_v23 }
 0x30f   : > { %v791_v39 = vmul.f32 -1.442695, %v628_v36 }
 0x310   : > { %v793_v40 = vmul.f32 -1.442695, %v630_v38  ;;  %v613_v41 = vpop.permute.xlu1 %612 }
 0x311   : > { %931 = vpow2.f32 %v791_v39  ;;  %v631_v42 = vadd.f32 %v848_v22, %v613_v41  ;;  %v615_v43 = vpop.permute.xlu0 %614 }
 0x312   : > { %933 = vpow2.f32 %v793_v40  ;;  %v632_v44 = vadd.f32 %v615_v43, %v585_v25 }
 0x313   : > { %v926_v45 = vpop.eup %925  ;;  %v794_v46 = vmul.f32 -1.442695, %v631_v42 }
 0x314   : > { %v928_v47 = vpop.eup %927  ;;  %v659_v48 = vadd.f32 1.0, %v926_v45  ;;  %v795_v49 = vmul.f32 -1.442695, %v632_v44  ;;  %v617_v50 = vpop.permute.xlu1 %616 }
 0x315   : > { %v658_v51 = vadd.f32 1.0, %v928_v47  ;;  %935 = vpow2.f32 %v794_v46  ;;  %v633_v52 = vadd.f32 %v851_v24, %v617_v50 }
 0x316   : > { %937 = vrcp.f32 %v659_v48 }
 0x317   : > { %v930_v53 = vpop.eup %929  ;;  %939 = vrcp.f32 %v658_v51  ;;  %v796_v54 = vmul.f32 -1.442695, %v633_v52 }
 0x318   : > { %v661_v55 = vadd.f32 1.0, %v930_v53  ;;  %941 = vpow2.f32 %v795_v49 }
 0x319   : > { %943 = vpow2.f32 %v796_v54 }
 0x31a   : > { %945 = vrcp.f32 %v661_v55 }
 0x31b   : > { %v932_v56 = vpop.eup %931 }
 0x31c   : > { %v934_v57 = vpop.eup %933  ;;  %v660_v58 = vadd.f32 1.0, %v932_v56 }
 0x31d   : > { %v662_v59 = vadd.f32 1.0, %v934_v57 }
 0x31e   : > { %947 = vrcp.f32 %v660_v58 }
 0x31f   : > { %v936_v60 = vpop.eup %935  ;;  %949 = vrcp.f32 %v662_v59 }
 0x320   : > { %v938_v61 = vpop.eup %937  ;;  %v663_v62 = vadd.f32 1.0, %v936_v60 }
 0x321   : > { %v940_v63 = vpop.eup %939  ;;  %683 = vst.msk [vmem:[%s207_s5 + $0x8] sm:$0xff] %vm367_vm1, %v938_v61 }
 0x322   : > { %v942_v0 = vpop.eup %941  ;;  %682 = vst.msk [vmem:[%s207_s5] sm:$0xff] %vm367_vm1, %v940_v63  ;;  %951 = vrcp.f32 %v663_v62 }
 0x323   : > { %v944_v1 = vpop.eup %943  ;;  %v664_v2 = vadd.f32 1.0, %v942_v0 }
 0x324   : > { %v946_v3 = vpop.eup %945  ;;  %v665_v4 = vadd.f32 1.0, %v944_v1 }
 0x325   : > { %685 = vst.msk [vmem:[%s207_s5 + $0x18] sm:$0xff] %vm367_vm1, %v946_v3  ;;  %953 = vrcp.f32 %v664_v2 }
 0x326   : > { %955 = vrcp.f32 %v665_v4 }
 0x328   : > { %v948_v5 = vpop.eup %947 }
 0x329   : > { %v950_v6 = vpop.eup %949  ;;  %684 = vst.msk [vmem:[%s207_s5 + $0x10] sm:$0xff] %vm367_vm1, %v948_v5 }
 0x32a   : > { %686 = vst.msk [vmem:[%s207_s5 + $0x20] sm:$0xff] %vm367_vm1, %v950_v6 }
 0x32c   : > { %v952_v7 = vpop.eup %951 }
 0x32d   : > { %687 = vst.msk [vmem:[%s207_s5 + $0x28] sm:$0xff] %vm367_vm1, %v952_v7 }
 0x32f   : > { %v954_v8 = vpop.eup %953 }
 0x330   : > { %v956_v9 = vpop.eup %955  ;;  %688 = vst.msk [vmem:[%s207_s5 + $0x30] sm:$0xff] %vm367_vm1, %v954_v8 }
 0x331   : > { %689 = vst.msk [vmem:[%s207_s5 + $0x38] sm:$0xff] %vm367_vm1, %v956_v9 }
 0x332 PF: > { %s16_s17 = sadd.s32 1, %s1037_s17   ;;  %s1266_s12 = smov %s1021_s13 }
 0x333   : > { %p13_p9 = scmp.ge.s32.totalorder %s16_s17, 4   ;;  %s1267_s13 = smov %s1025_s14 }
 0x334   : > { %s1268_s14 = smov %s1115_s24  ;;  %s1269_s15 = smov %s1033_s16 }
 0x335   : > { %s1270_s16 = smov %s1272_s19  ;;  %15 = sbr.rel (!%p13_p9) target bundleno = 4 (0x4), region = 80 }
 0x33c   :  { %711 = vsyncpa [#allocation5], 1 }
 0x33d   :  { %713 = vsyncpa [#allocation5 + $0x1], 1 }

</bundles_post_ra>
